<compile_context>
chip_gen: v7x
topology: tpu7x:2x2x1
jax: 0.10.0
libtpu: 0.0.40
codegen_flags: <defaults>
</compile_context>

<pallas_src>
import functools
import math

import jax
import jax.numpy as jnp
import numpy as np
from jax.experimental import pallas as pl
from jax.experimental.pallas import tpu as pltpu


def tcn_kernel(mask_ref, x_ref, w_ref, b_ref, o_ref, *, c_out):
    # mask_ref: (1, T)        f32: 0.0 at lanes where w == 0, 1.0 elsewhere
    # x_ref   : (1, C_in, T)  current tile of x, lanes = flattened (h, w)
    # w_ref   : (2*C_out, 2*C_in) fused [filter; gate] x [tap w-1 | tap w]
    # b_ref   : (2*C_out, 1)  fused [filter; gate] biases
    # o_ref   : (1, C_out, T)
    x = x_ref[0]                                        # (C_in, T)

    # Previous-time tap: x_prev[:, l] = x[:, l-1], zeroed where w == 0.
    # Every tile starts at a multiple of W, so the precomputed per-tile mask
    # also kills the wrap-around lane produced by the roll.
    x_prev = pltpu.roll(x, shift=1, axis=1) * mask_ref[...]

    # Single fused MXU matmul over both temporal taps and both convolutions.
    rhs = jnp.concatenate([x_prev, x], axis=0)          # (2*C_in, T)
    acc = (
        jnp.dot(w_ref[...], rhs, preferred_element_type=jnp.float32)
        + b_ref[...]
    )                                                   # (2*C_out, T) f32

    filt = acc[:c_out, :]
    gate = acc[c_out:, :]
    o_ref[0] = (jnp.tanh(filt) * jax.nn.sigmoid(gate)).astype(o_ref.dtype)


def tcn_forward(x, wf, bf, wg, bg, *, tile_lanes=65536,
                vmem_limit_bytes=32 * 1024 * 1024):
    """x: (N, C_in, H, W) f32; wf/wg: (C_out, C_in, 1, 2); bf/bg: (C_out,)."""
    N, C_in, H, W = x.shape
    C_out = wf.shape[0]
    HW = H * W

    x3 = x.reshape(N, C_in, HW)                         # free contiguous reshape

    # Fused weight: rows = [filter; gate], cols = [tap w-1 | tap w].
    w_prev = jnp.concatenate([wf[:, :, 0, 0], wg[:, :, 0, 0]], axis=0)  # (2*C_out, C_in)
    w_curr = jnp.concatenate([wf[:, :, 0, 1], wg[:, :, 0, 1]], axis=0)  # (2*C_out, C_in)
    w_full = jnp.concatenate([w_prev, w_curr], axis=1)                  # (2*C_out, 2*C_in)
    b_full = jnp.concatenate([bf, bg], axis=0).reshape(2 * C_out, 1)

    # ---- lane-tile selection ----
    # Tiles must start at w == 0 (multiple of W); keep them 128-lane aligned
    # and, when possible, an exact divisor of H*W (no ragged last block).
    step = (W * 128) // math.gcd(W, 128)                # lcm(W, 128)

    # Cap the tile so double-buffered blocks + live intermediates fit VMEM.
    bytes_per_lane = 4 * (6 * C_in + 6 * C_out + 2)     # rough per-lane estimate
    vmem_budget = int(0.75 * vmem_limit_bytes)
    max_lanes = max(step, vmem_budget // max(bytes_per_lane, 1))
    want = min(tile_lanes, max_lanes)

    if HW <= max(want, step):
        tile = HW
    else:
        tile = max(step, (want // step) * step)
        t = tile
        while t >= step:                                # prefer exact divisor of HW
            if HW % t == 0:
                tile = t
                break
            t -= step
    assert tile == HW or tile % W == 0, (
        "tile must stay W-aligned for the roll+mask causal tap")
    num_t = pl.cdiv(HW, tile)

    # Precomputed w==0 mask (identical for every W-aligned tile); fetched once.
    mask = (jnp.arange(tile, dtype=jnp.int32) % W != 0).astype(x.dtype)
    mask = mask.reshape(1, tile)

    kernel = functools.partial(tcn_kernel, c_out=C_out)

    out = pl.pallas_call(
        kernel,
        out_shape=jax.ShapeDtypeStruct((N, C_out, HW), x.dtype),
        grid_spec=pl.GridSpec(
            grid=(num_t, N),                            # big tile axis leads (2-TC)
            in_specs=[
                pl.BlockSpec((1, tile), lambda t, n: (0, 0)),
                pl.BlockSpec((1, C_in, tile), lambda t, n: (n, 0, t)),
                pl.BlockSpec((2 * C_out, 2 * C_in), lambda t, n: (0, 0)),
                pl.BlockSpec((2 * C_out, 1), lambda t, n: (0, 0)),
            ],
            out_specs=pl.BlockSpec((1, C_out, tile), lambda t, n: (n, 0, t)),
        ),
        compiler_params=pltpu.CompilerParams(
            dimension_semantics=("parallel", "parallel"),
            vmem_limit_bytes=vmem_limit_bytes,
        ),
    )(mask, x3, w_full, b_full)

    return out.reshape(N, C_out, H, W)


def tcn_reference(x, wf, bf, wg, bg):
    """Pure-JAX reference mirroring the PyTorch forward exactly."""
    xpad = jnp.pad(x, ((0, 0), (0, 0), (0, 0), (1, 0)))

    def conv(w, bias):
        return (
            jnp.einsum("nchw,oc->nohw", xpad[..., :-1], w[:, :, 0, 0])
            + jnp.einsum("nchw,oc->nohw", xpad[..., 1:], w[:, :, 0, 1])
            + bias[None, :, None, None]
        )

    return jnp.tanh(conv(wf, bf)) * jax.nn.sigmoid(conv(wg, bg))


if __name__ == "__main__":
    key = jax.random.PRNGKey(0)
    k_x, k_wf, k_bf, k_wg, k_bg = jax.random.split(key, 5)

    N, C_in, C_out, H, W = 2, 4, 8, 16, 16
    x = jax.random.normal(k_x, (N, C_in, H, W), dtype=jnp.float32)

    # Deterministic synthetic parameters (PyTorch shapes: (c_out, c_in, 1, 2) + (c_out,))
    wf = 0.5 * jax.random.normal(k_wf, (C_out, C_in, 1, 2), dtype=jnp.float32)
    bf = 0.1 * jax.random.normal(k_bf, (C_out,), dtype=jnp.float32)
    wg = 0.5 * jax.random.normal(k_wg, (C_out, C_in, 1, 2), dtype=jnp.float32)
    bg = 0.1 * jax.random.normal(k_bg, (C_out,), dtype=jnp.float32)

    out = jax.block_until_ready(tcn_forward(x, wf, bf, wg, bg))
    ref = jax.block_until_ready(tcn_reference(x, wf, bf, wg, bg))
    np.testing.assert_allclose(np.asarray(out), np.asarray(ref), rtol=1e-5, atol=1e-5)

    print("KERNEL_OK")
</pallas_src>

<mosaic_0001>
module attributes {stable_mosaic.version = 11 : i64} {
  func.func @tcn_kernel(%arg0: i32, %arg1: i32, %arg2: memref<1x256xf32, #tpu.memory_space<vmem>>, %arg3: memref<1x4x256xf32, #tpu.memory_space<vmem>>, %arg4: memref<16x8xf32, #tpu.memory_space<vmem>>, %arg5: memref<16x1xf32, #tpu.memory_space<vmem>>, %arg6: memref<1x8x256xf32, #tpu.memory_space<vmem>>) attributes {dimension_semantics = [#tpu.dimension_semantics<parallel>, #tpu.dimension_semantics<parallel>], iteration_bounds = array<i64: 1, 2>, scalar_prefetch = 0 : i64, scratch_operands = 0 : i64, tpu.core_type = #tpu.core_type<tc>, window_params = [{pipeline_mode = #tpu.pipeline_mode<synchronous>, transform_indices = @transform_0, window_bounds = array<i64: 1, 256>}, {transform_indices = @transform_1, window_bounds = array<i64: 1, 4, 256>}, {pipeline_mode = #tpu.pipeline_mode<synchronous>, transform_indices = @transform_2, window_bounds = array<i64: 16, 8>}, {pipeline_mode = #tpu.pipeline_mode<synchronous>, transform_indices = @transform_3, window_bounds = array<i64: 16, 1>}, {transform_indices = @transform_4, window_bounds = array<i64: 1, 8, 256>}]} {
    %c0 = arith.constant 0 : index
    %c0_0 = arith.constant 0 : index
    %c0_1 = arith.constant 0 : index
    %0 = vector.load %arg3[%c0, %c0_0, %c0_1] : memref<1x4x256xf32, #tpu.memory_space<vmem>>, vector<1x4x256xf32>
    %1 = vector.shape_cast %0 : vector<1x4x256xf32> to vector<4x256xf32>
    %c1_i32 = arith.constant 1 : i32
    %2 = tpu.dynamic_rotate %1 by %c1_i32 dim 1 : vector<4x256xf32>, i32 -> vector<4x256xf32>
    %c0_2 = arith.constant 0 : index
    %c0_3 = arith.constant 0 : index
    %3 = vector.load %arg2[%c0_2, %c0_3] : memref<1x256xf32, #tpu.memory_space<vmem>>, vector<1x256xf32>
    %4 = vector.broadcast %3 : vector<1x256xf32> to vector<4x256xf32>
    %5 = arith.mulf %2, %4 : vector<4x256xf32>
    %6 = tpu.concatenate %5, %1 in 0 : vector<4x256xf32>, vector<4x256xf32> -> vector<8x256xf32>
    %c0_4 = arith.constant 0 : index
    %c0_5 = arith.constant 0 : index
    %7 = vector.load %arg4[%c0_4, %c0_5] : memref<16x8xf32, #tpu.memory_space<vmem>>, vector<16x8xf32>
    %cst = arith.constant dense<0.000000e+00> : vector<16x256xf32>
    %8 = tpu.matmul %7, %6, %cst {dimension_numbers = #tpu.dot_dimension_numbers<[1], [0], [0], [1], [0, 0, 1, 1], [], []>} : vector<16x8xf32>, vector<8x256xf32>, vector<16x256xf32> -> vector<16x256xf32>
    %c0_6 = arith.constant 0 : index
    %c0_7 = arith.constant 0 : index
    %9 = vector.load %arg5[%c0_6, %c0_7] : memref<16x1xf32, #tpu.memory_space<vmem>>, vector<16x1xf32>
    %10 = vector.broadcast %9 : vector<16x1xf32> to vector<16x256xf32>
    %11 = arith.addf %8, %10 : vector<16x256xf32>
    %12 = vector.extract_strided_slice %11 {offsets = [0, 0], sizes = [8, 256], strides = [1, 1]} : vector<16x256xf32> to vector<8x256xf32>
    %13 = vector.extract_strided_slice %11 {offsets = [8, 0], sizes = [8, 256], strides = [1, 1]} : vector<16x256xf32> to vector<8x256xf32>
    %14 = math.tanh %12 : vector<8x256xf32>
    %15 = arith.negf %13 : vector<8x256xf32>
    %16 = math.exp %15 : vector<8x256xf32>
    %cst_8 = arith.constant 1.000000e+00 : f32
    %17 = vector.broadcast %cst_8 : f32 to vector<8x256xf32>
    %18 = arith.addf %17, %16 : vector<8x256xf32>
    %19 = arith.divf %17, %18 : vector<8x256xf32>
    %20 = arith.mulf %14, %19 : vector<8x256xf32>
    %c0_9 = arith.constant 0 : index
    %c0_10 = arith.constant 0 : index
    %c0_11 = arith.constant 0 : index
    %21 = vector.load %arg6[%c0_9, %c0_10, %c0_11] : memref<1x8x256xf32, #tpu.memory_space<vmem>>, vector<1x8x256xf32>
    %22 = vector.shape_cast %21 : vector<1x8x256xf32> to vector<8x256xf32>
    %23 = vector.shape_cast %20 : vector<8x256xf32> to vector<1x8x256xf32>
    tpu.vector_store %arg6[%c0_9, %c0_10, %c0_11], %23 {strides = array<i32>} : memref<1x8x256xf32, #tpu.memory_space<vmem>>, vector<1x8x256xf32>,
    return
  }
  func.func @transform_0(%arg0: i32, %arg1: i32) -> (i32, i32) {
    %c0_i32 = arith.constant 0 : i32
    %c0_i32_0 = arith.constant 0 : i32
    %c0_i32_1 = arith.constant 0 : i32
    return %c0_i32, %c0_i32_0 : i32, i32
  }
  func.func @transform_1(%arg0: i32, %arg1: i32) -> (i32, i32, i32) {
    %c0_i32 = arith.constant 0 : i32
    %c0_i32_0 = arith.constant 0 : i32
    return %arg1, %c0_i32, %arg0 : i32, i32, i32
  }
  func.func @transform_2(%arg0: i32, %arg1: i32) -> (i32, i32) {
    %c0_i32 = arith.constant 0 : i32
    %c0_i32_0 = arith.constant 0 : i32
    %c0_i32_1 = arith.constant 0 : i32
    return %c0_i32, %c0_i32_0 : i32, i32
  }
  func.func @transform_3(%arg0: i32, %arg1: i32) -> (i32, i32) {
    %c0_i32 = arith.constant 0 : i32
    %c0_i32_0 = arith.constant 0 : i32
    %c0_i32_1 = arith.constant 0 : i32
    return %c0_i32, %c0_i32_0 : i32, i32
  }
  func.func @transform_4(%arg0: i32, %arg1: i32) -> (i32, i32, i32) {
    %c0_i32 = arith.constant 0 : i32
    %c0_i32_0 = arith.constant 0 : i32
    return %arg1, %c0_i32, %arg0 : i32, i32, i32
  }
}

</mosaic_0001>

<bundles_post_ra>
// kernel: tpu_custom_call.1
= control target key start
LH: loop header
LB: loop body
LE: loop exit
PB: predicated region body
PF: predicated region fallthrough
CT: control target
= control target key end

     0   :  { %9 = vsyncpa [#allocation3], 0  ;;  %s799_s0 = inlined_call_operand.vmem [shape: f32[1,256], index: 0, kind: input, shape index: {}]   ;;  %s800_s1 = inlined_call_operand.vmem [shape: f32[2,4,256], index: 1, kind: input, shape index: {}]   ;;  %s801_s2 = inlined_call_operand.vmem [shape: f32[16,8], index: 2, kind: input, shape index: {}]   ;;  %s802_s3 = inlined_call_operand.vmem [shape: f32[16,1], index: 3, kind: input, shape index: {}]   ;;  %s803_s4 = inlined_call_operand.hbm [shape: f32[2,8,256], index: 4, kind: output, shape index: {}]  }
   0x1   :  { %11 = vsyncpa [#allocation3 + $0x1], 0  ;;  %s672_s15 = smov 0   ;;  %s674_s16 = smov 0  }
   0x2   :  { %s676_s17 = smov 0   ;;  %s678_s18 = smov 0  }
   0x3   :  { %s680_s19 = smov 0   ;;  %s682_s20 = smov 0  }
   0x4 LB: > { %s468_s21 = sadd.s32 4294967295, %s641_s20   ;;  %s469_s22 = sadd.s32 4294967294, %s641_s20   ;;  %s641_s20 = sphi %s682_s20, %s17_s20   ;;  %s637_s19 = sphi %s680_s19, %s810_s19   ;;  %s633_s18 = sphi %s678_s18, %s809_s18   ;;  %s629_s17 = sphi %s676_s17, %s808_s17   ;;  %s625_s16 = sphi %s674_s16, %s807_s16   ;;  %s621_s15 = sphi %s672_s15, %s806_s15  }
   0x5   : > { %s26_s23 = sadd.s32 1, %s637_s19  ;;  %s129_s24 = sadd.s32 1, %s629_s17 }
   0x6   : > { %p27_p0 = scmp.ge.s32.totalorder %s26_s23, 2  ;;  %p139_p1 = scmp.ne.s32.totalorder %s629_s17, %s625_s16 }
   0x7   : > { %p140_p2 = scmp.eq.s32.totalorder %s468_s21, 1  ;;  %p145_p3 = scmp.ne.s32.totalorder %s625_s16, %s621_s15 }
   0x8   : > { %s812_s23 = smov (%p27_p0, %s26_s23), 0  ;;  %p146_p5 = scmp.eq.s32.totalorder %s469_s22, 1 }
   0x9   : > { %p712_p4 = por %p140_p2, %p139_p1  ;;  %s124_s26 = ssub.s32 %s637_s19, %s812_s23 }
   0xa   : > { %p472_p6 = scmp.ge.s32.totalorder %s641_s20, 1  ;;  %p127_p7 = scmp.eq.s32.totalorder %s124_s26, 0 }
   0xb   : > { %p719_p8 = por %p146_p5, %p145_p3  ;;  %p186_p9 = scmp.lt.s32.totalorder %s641_s20, 3 }
   0xc   : > { %s725_s28 = scalar_select %p127_p7, %s629_s17, %s129_s24  }
   0xd   : > { %p187_p10 = pnand %p472_p6, %p186_p9 }
   0xe   : > { %p217_p11 = scmp.lt.s32.totalorder (!%p187_p10), %s633_s18, 1  ;;  %v643_v0 = vmov (!%p187_p10), 0.0   ;;  %v262_v1 = vld [vmem:[%s802_s3 + $0x8] sm:$0xff] (!%p187_p10)  ;;  %v644_v2 = vmov (!%p187_p10), 0   ;;  %s645_s10 = smov (!%p187_p10), 1   ;;  %v261_v5 = vld [vmem:[%s802_s3] sm:$0xff] (!%p187_p10)  ;;  %v235_v6 = vlaneseq (!%p187_p10) }
   0xf   : > { %190 = sbr.rel (%p187_p10) target bundleno = 409 (0x199), region = 36  ;;  %344 = vmatprep.mubr.f32.mxu0 (!%p187_p10), %v643_v0  ;;  %350 = vmatprep.mubr.f32.mxu1 (!%p187_p10), %v643_v0  ;;  %v240_v11 = vld [vmem:[%s799_s0] sm:$0x3] (!%p187_p10)  ;;  %vm256_vm1 = vcmask (!%p187_p10), 1043456   ;;  %vm273_vm2 = vcmask (!%p187_p10), 64512   ;;  %v260_v24 = vld [vmem:[%s801_s2 + $0x8] sm:$0xff] (!%p187_p10) }
  0x10   : > { %547 = vset.pattern.permute.xlu1 (!%p187_p10), %v644_v2  ;;  %548 = vset.pattern.permute.xlu0 (!%p187_p10), %v644_v2  ;;  %v243_v7 = vshrl.u32 (!%p187_p10), %v235_v6, 7  ;;  %v236_v8 = vand.u32 (!%p187_p10), 127, %v235_v6  ;;  %v259_v23 = vld [vmem:[%s801_s2] sm:$0xff] (!%p187_p10)  ;;  %s486_s5 = sshll.u32 (!%p187_p10), %s633_s18, 8  ;;  %s646_s12 = smov (!%p187_p10), [#allocation2]  }
  0x11   : > { %270 = vperm.xlu1 (!%p187_p10), %547, %v262_v1   ;;  %s567_s13 = sshll.u32 (!%p187_p10), %s646_s12, 4  ;;  %s568_s13 = int_to_ptr.vmem [resolvable:$false] %s567_s13 }
  0x12   : > { %v244_v9 = vsub.s32 (!%p187_p10), 0, %v243_v7  ;;  %v248_v10 = vsub.s32 (!%p187_p10), 1, %v243_v7  ;;  %vm237_vm0 = vcmp.lt.s32.totalorder (!%p187_p10), %v236_v8, 1  ;;  %s569_s14 = scalar_lea.vmem (!%p187_p10), %s568_s13, 512 }
  0x14   : > { %v245_v13 = vrot.slane (!%p187_p10), %v240_v11, %v244_v9  ;;  %v249_v14 = vrot.slane (!%p187_p10), %v240_v11, %v248_v10 }
  0x15   : > { %265 = vperm.xlu1 (!%p187_p10), %547, %v261_v5  }
  0x16   : > { %s218_s29 = scalar_select %p217_p11, %s633_s18, 1 }
  0x18   : > { %s485_s30 = sshll.u32 %s218_s29, 3  ;;  %s213_s29 = sand.u32 1, %s625_s16  }
  0x19   : > { %s224_s9 = scalar_lea.vmem %s800_s1, %s485_s30  ;;  %s473_s30 = sshll.u32 %s213_s29, 4 }
  0x1a   : > { %v227_v3 = vld [vmem:[%s224_s9] sm:$0xff]  ;;  %s215_s6 = scalar_lea.vmem [#allocation2], %s473_s30  ;;  %s376_s11 = scalar_lea.sflag [#allocation3], %s213_s29 }
  0x1b   : > { %231 = vrot.lane.b32.xlu0 %v227_v3, %s645_s10  ;;  %v229_v4 = vcombine.high %v227_v3, %v227_v3  ;;  %v254_v16 = vcombine.low %v227_v3, %v227_v3  ;;  %s392_s7 = sshll.u32 %s215_s6, 4  ;;  %s754_s7 = int_to_ptr.vmem [resolvable:$true] %s392_s7 }
  0x1c   : > { %s563_s18 = scalar_lea.vmem %s754_s7, 256  ;;  %p570_p1 = scmp.lt.s32.totalorder %s754_s7, %s568_s13 }
  0x1d   : > { %p564_p12 = scmp.ne.s32.totalorder %s754_s7, %s563_s18  ;;  %p571_p2 = scmp.lt.s32.totalorder %s569_s14, %s563_s18 }
  0x1f   : > { %233 = vrot.lane.b32.xlu0 %v229_v4, %s645_s10  ;;  %s752_s10 = scalar_lea.hbm %s803_s4, %s486_s5  ;;  %p565_p13 = pnand %p564_p12, %p712_p4 }
  0x20   : > { %p572_p3 = por %p571_p2, %p570_p1 }
  0x21   : > { %p566_p0 = pneg %p565_p13 }
  0x23   : > { %p573_p5 = pnand %p572_p3, %p566_p0 }
  0x8d   : > { %v232_v12 = vpop.permute.xlu0 %231 }
  0x90   : > { %v271_v25 = vpop.permute.xlu1 %270 }
  0x91   : > { %v234_v15 = vpop.permute.xlu0 %233 }
  0x92   : > { %v238_v17 = vsel %vm237_vm0, %v232_v12, %v234_v15  ;;  %v239_v18 = vsel %vm237_vm0, %v234_v15, %v232_v12 }
  0x93   : > { %v252_v19 = vmul.f32 %v245_v13, %v239_v18  ;;  %v253_v20 = vmul.f32 %v249_v14, %v238_v17 }
  0x94   : > { %v266_v34 = vpop.permute.xlu1 %265 }
  0x95   : > { %v258_v21 = vsel %vm256_vm1, %v253_v20, %v227_v3  ;;  %v257_v22 = vsel %vm256_vm1, %v252_v19, %v254_v16 }
  0x96   : > { %280 = vmatprep.subr.mxu0 %v258_v21  ;;  %487 = vmatprep.subr.mxu1 %v258_v21 }
  0x97   : > { %281 = vmatpush1.msra.mxu0 %v257_v22  ;;  %488 = vmatpush1.msra.mxu1 %v257_v22 }
  0x98   : > { %476 = vmatmul.mubr.msk.f32.vlgmr.msra.gmra.mrb[0].mxu0 %vm273_vm2, %v259_v23  ;;  %477 = vmatmul.mubr.msk.f32.vlgmr.msra.gmra.mrb[0].mxu1 %vm273_vm2, %v260_v24 }
 0x16b   : > { %v346_v26 = vpop.f32.mrb[0].mxu0  ;;  %v352_v27 = vpop.f32.mrb[0].mxu1 }
 0x16c   : > { %v353_v28 = vadd.f32 %v352_v27, %v271_v25  ;;  %v348_v29 = vpop.f32.mrb[1].mxu0  ;;  %v354_v30 = vpop.f32.mrb[1].mxu1  ;;  %v347_v35 = vadd.f32 %v346_v26, %v266_v34 }
 0x16d   : > { %v355_v31 = vadd.f32 %v354_v30, %v271_v25  ;;  %v349_v36 = vadd.f32 %v348_v29, %v266_v34 }
 0x16e   : > { %v478_v32 = vmul.f32 -1.442695, %v353_v28 }
 0x16f   : > { %v479_v33 = vmul.f32 -1.442695, %v355_v31 }
 0x170   : > { %551 = vpow2.f32 %v478_v32 }
 0x171   : > { %553 = vpow2.f32 %v479_v33 }
 0x172   : > { %555 = vtanh.f32 %v347_v35 }
 0x173   : > { %557 = vtanh.f32 %v349_v36 }
 0x17a   : > { %v552_v37 = vpop.eup %551 }
 0x17b   : > { %v554_v38 = vpop.eup %553  ;;  %v365_v39 = vadd.f32 1.0, %v552_v37 }
 0x17c   : > { %v366_v40 = vadd.f32 1.0, %v554_v38  ;;  %v556_v41 = vpop.eup %555 }
 0x17d   : > { %559 = vrcp.f32 %v365_v39  ;;  %v558_v42 = vpop.eup %557 }
 0x17e   : > { %561 = vrcp.f32 %v366_v40 }
 0x187   : > { %v560_v43 = vpop.eup %559 }
 0x188   : > { %v562_v44 = vpop.eup %561  ;;  %v371_v45 = vmul.f32 %v560_v43, %v556_v41 }
 0x189   : > { %v372_v46 = vmul.f32 %v562_v44, %v558_v42 }
 0x18a   : > { %373 = vst [vmem:[%s215_s6] sm:$0xff] %v371_v45 }
 0x18b   : > { %374 = vst [vmem:[%s215_s6 + $0x8] sm:$0xff] %v372_v46 }
 0x18c   : > { %576 = shalt.err (!%p573_p5)
}
 0x18d   : > { %s577_s21 = scalar_lea.hbm %s752_s10, 256  ;;  %s581_s26 = scalar_lea.hbm %s803_s4, 512 }
 0x18e   : > { %p578_p6 = scmp.ne.s32.totalorder %s752_s10, %s577_s21  ;;  %p582_p10 = scmp.lt.u32.totalorder %s752_s10, %s803_s4 }
 0x18f   : > { %p583_p11 = scmp.lt.u32.totalorder %s581_s26, %s577_s21  ;;  %p585_p13 = scmp.lt.u32.totalorder %s577_s21, %s752_s10 }
 0x190   : > { %p579_p7 = pnand %p578_p6, %p712_p4 }
 0x191   : > { %p584_p12 = por %p583_p11, %p582_p10 }
 0x192   : > { %p580_p9 = pneg %p579_p7 }
 0x193   : > { %p586_p0 = por %p585_p13, %p584_p12 }
 0x195   : > { %p587_p1 = pnand %p586_p0, %p580_p9 }
 0x197   : > { %590 = shalt.err (!%p587_p1)
}
 0x198   : > { %489 = dma.vmem_to_hbm [thread:$0]  (%p712_p4), %s754_s7, 256, %s752_s10, %s376_s11  }
 0x199 PF: > { %p495_p2 = scmp.ge.s32.totalorder %s641_s20, 2  ;;  %s404_s5 = sand.u32 1, %s621_s15  }
 0x19a   : > { %s405_s6 = scalar_lea.sflag [#allocation3], %s404_s5 }
 0x19b   : > { %p492_p3 = pnand %p495_p2, %p719_p8 }
 0x19d   : > { %616 = dma.done.wait (!%p492_p3), %s405_s6, 256  }
 0x19e   : > { %618 = vsyncadd (!%p492_p3), %s405_s6, 4294967040  ;;  %s17_s20 = sadd.s32 1, %s641_s20   ;;  %s806_s15 = smov %s625_s16 }
 0x19f   : > { %p14_p5 = scmp.ge.s32.totalorder %s17_s20, 4   ;;  %s807_s16 = smov %s629_s17 }
 0x1a0   : > { %s808_s17 = smov %s725_s28  ;;  %s809_s18 = smov %s637_s19 }
 0x1a1   : > { %s810_s19 = smov %s812_s23  ;;  %16 = sbr.rel (!%p14_p5) target bundleno = 4 (0x4), region = 71 }
 0x1a8   :  { %410 = vsyncpa [#allocation3], 1 }
 0x1a9   :  { %412 = vsyncpa [#allocation3 + $0x1], 1 }

</bundles_post_ra>
